<compile_context>
chip_gen: v5e
topology: v5e:2x2
jax: 0.10.0
libtpu: 0.0.40
codegen_flags: <defaults>
</compile_context>

<pallas_src>
import jax
import jax.numpy as jnp
from jax import lax
from jax.experimental import pallas as pl
from jax.experimental.pallas import tpu as pltpu

K_NEIGHBORS = 3  # self.K = 3, self.J = 0


def _noise_vpt_kernel(lhs_ref, e_ref, o_ref):
    # lhs_ref: (P, 2D+1)   augmented centroid bank  [ -2*C | 1_D | ||c||^2 ]
    # e_ref  : (D, M_blk)  embeddings, pixels on the lane axis (lane-dense)
    # o_ref  : (1, M_blk)  output scores (lane-dense, unmasked store)
    lhs = lhs_ref[...]
    e = e_ref[...]
    p = lhs.shape[0]
    m_blk = e.shape[1]

    # RHS_aug = [ E ; E*E ; 1 ] stacked on the contraction (sublane) axis.
    rhs = jnp.concatenate(
        [e, e * e, jnp.ones((1, m_blk), jnp.float32)], axis=0)       # (2D+1, M_blk)

    # Single MXU pass: full squared distances  ||e||^2 + ||c||^2 - 2 c.e
    dist_sq = lax.dot_general(
        lhs, rhs, dimension_numbers=(((1,), (0,)), ((), ())),
        preferred_element_type=jnp.float32)                          # (P, M_blk)

    # Branchless top-3-smallest over the P rows (pure VPU min/max, no XLU
    # argmin; duplicate values preserved exactly like torch.topk-by-value).
    # Seed with a 3-element sorting network over rows 0..2, then insert the
    # remaining P-3 rows.
    r0 = dist_sq[0:1, :]
    r1 = dist_sq[1:2, :]
    r2 = dist_sq[2:3, :]
    a = jnp.minimum(r0, r1)
    b = jnp.maximum(r0, r1)
    m2 = jnp.maximum(b, r2)
    b = jnp.minimum(b, r2)
    m0 = jnp.minimum(a, b)
    m1 = jnp.maximum(a, b)
    for i in range(3, p):          # static unroll, P is small
        x = dist_sq[i:i + 1, :]
        lo = jnp.minimum(m0, x); x = jnp.maximum(m0, x); m0 = lo
        lo = jnp.minimum(m1, x); x = jnp.maximum(m1, x); m1 = lo
        m2 = jnp.minimum(m2, x)

    # sqrt only on the 3 selected rows; clamp tiny negative FP cancellation
    # (documented divergence: torch would produce NaN there).
    d0 = jnp.sqrt(jnp.maximum(m0, 0.0))
    d1 = jnp.sqrt(jnp.maximum(m1, 0.0))
    d2 = jnp.sqrt(jnp.maximum(m2, 0.0))

    # softmin weight of the minimum:  w0 = 1 / (1 + exp(d0-d1) + exp(d0-d2)),
    # exact division; final score = w0 * d0.
    o_ref[...] = d0 / (1.0 + jnp.exp(d0 - d1) + jnp.exp(d0 - d2))


def noise_vpt_forward(embeds, centroids, h, w, num_blocks=None):
    """embeds: (B, N, D) float32, centroids: (P, D) float32 -> (B, 1, H, W)."""
    b, n, d = embeds.shape
    p, dc = centroids.shape
    assert n == h * w
    assert dc == d
    assert p >= K_NEIGHBORS, "need at least K centroids"

    m = b * n
    # TODO(synk): pad the pixel axis if B*H*W is not a multiple of 128 lanes.
    assert m % 128 == 0, "B*H*W must be a multiple of 128 lanes"
    if num_blocks is None:
        # Two lane-dense grid steps feed both v7x TensorCores; on single-TC
        # v5e/v6e the second step adds only ~0.35 us of pipeline overhead.
        num_blocks = 2 if (m % 256 == 0) else 1
    assert m % num_blocks == 0
    m_blk = m // num_blocks
    assert m_blk % 128 == 0

    # Batch-invariant augmented centroid bank:  [ -2*C | 1_D | ||c||^2 ]
    c_norm = jnp.sum(centroids * centroids, axis=1, keepdims=True)          # (P, 1)
    lhs_aug = jnp.concatenate(
        [-2.0 * centroids, jnp.ones((p, d), jnp.float32), c_norm], axis=1)  # (P, 2D+1)

    # Layout plumbing (wrapper-side): pixels on the lane axis, batch folded
    # into the pixel axis -> one contiguous (D, B*N) slab.
    e_t = jnp.transpose(embeds, (2, 0, 1)).reshape(d, m)                    # (D, B*N)

    out = pl.pallas_call(
        _noise_vpt_kernel,
        out_shape=jax.ShapeDtypeStruct((1, m), jnp.float32),
        grid_spec=pltpu.PrefetchScalarGridSpec(
            num_scalar_prefetch=0,
            grid=(num_blocks,),
            in_specs=[
                pl.BlockSpec((p, 2 * d + 1), lambda i: (0, 0)),
                pl.BlockSpec((d, m_blk), lambda i: (0, i)),
            ],
            out_specs=pl.BlockSpec((1, m_blk), lambda i: (0, i)),
        ),
        compiler_params=pltpu.CompilerParams(
            dimension_semantics=("parallel",),
        ),
    )(lhs_aug, e_t)

    # Columns are ordered [batch 0 pixels..., batch 1 pixels, ...].
    return out.reshape(b, 1, h, w)


def _reference_forward(embeds, centroids, h, w):
    feats = jnp.sum(embeds ** 2, axis=2, keepdims=True)
    cents = jnp.sum(centroids ** 2, axis=1)[None, None, :]
    f_c = 2.0 * jnp.einsum("bnd,pd->bnp", embeds, centroids)
    dist = jnp.sqrt(jnp.maximum(feats + cents - f_c, 0.0))
    neg_topk, _ = jax.lax.top_k(-dist, K_NEIGHBORS)
    dk = -neg_topk                                                   # ascending
    wts = jax.nn.softmax(-dk, axis=-1)                               # softmin
    dissim = wts[..., 0] * dk[..., 0]
    return dissim.reshape(embeds.shape[0], 1, h, w)


if __name__ == "__main__":
    # Small shapes consistent with the module:
    #   args.feat_dim = 32, args.fp_nums = 16*16 = 256, nmb_prototypes = 8
    B, D = 2, 32
    H = W = 16
    N = H * W
    P = 8

    key = jax.random.PRNGKey(0)
    k_e, k_c = jax.random.split(key)
    embeds = jax.random.normal(k_e, (B, N, D), dtype=jnp.float32)
    centroids = jax.random.normal(k_c, (P, D), dtype=jnp.float32)

    # NOTE: Descriptor (CoordConv2d 1x1) belongs to the feature pipeline, not
    # to Noise_VPT.forward(embeds, centroids); forward consumes projected embeds.
    score = noise_vpt_forward(embeds, centroids, H, W)
    score = jax.block_until_ready(score)

    ref = _reference_forward(embeds, centroids, H, W)
    assert score.shape == (B, 1, H, W)
    # With the exact-division softmin the kernel tracks the reference to
    # matmul-pass precision; tolerance kept loose only to absorb XLA's own
    # default-precision einsum in the reference.
    assert jnp.allclose(score, ref, atol=1e-2, rtol=1e-2), "mismatch vs reference"

    print("KERNEL_OK")
</pallas_src>

<mosaic_0001>
module attributes {stable_mosaic.version = 11 : i64} {
  func.func @_noise_vpt_kernel(%arg0: i32, %arg1: memref<8x65xf32, #tpu.memory_space<vmem>>, %arg2: memref<32x256xf32, #tpu.memory_space<vmem>>, %arg3: memref<1x256xf32, #tpu.memory_space<vmem>>) attributes {dimension_semantics = [#tpu.dimension_semantics<parallel>], iteration_bounds = array<i64: 2>, scalar_prefetch = 0 : i64, scratch_operands = 0 : i64, tpu.core_type = #tpu.core_type<tc>, window_params = [{pipeline_mode = #tpu.pipeline_mode<synchronous>, transform_indices = @transform_0, window_bounds = array<i64: 8, 65>}, {transform_indices = @transform_1, window_bounds = array<i64: 32, 256>}, {transform_indices = @transform_2, window_bounds = array<i64: 1, 256>}]} {
    %c0 = arith.constant 0 : index
    %c0_0 = arith.constant 0 : index
    %0 = vector.load %arg1[%c0, %c0_0] : memref<8x65xf32, #tpu.memory_space<vmem>>, vector<8x65xf32>
    %c0_1 = arith.constant 0 : index
    %c0_2 = arith.constant 0 : index
    %1 = vector.load %arg2[%c0_1, %c0_2] : memref<32x256xf32, #tpu.memory_space<vmem>>, vector<32x256xf32>
    %2 = arith.mulf %1, %1 : vector<32x256xf32>
    %cst = arith.constant 1.000000e+00 : f32
    %3 = vector.broadcast %cst : f32 to vector<1x256xf32>
    %4 = tpu.concatenate %1, %2, %3 in 0 : vector<32x256xf32>, vector<32x256xf32>, vector<1x256xf32> -> vector<65x256xf32>
    %cst_3 = arith.constant dense<0.000000e+00> : vector<8x256xf32>
    %5 = tpu.matmul %0, %4, %cst_3 {dimension_numbers = #tpu.dot_dimension_numbers<[1], [0], [0], [1], [0, 0, 1, 1], [], []>} : vector<8x65xf32>, vector<65x256xf32>, vector<8x256xf32> -> vector<8x256xf32>
    %6 = vector.extract_strided_slice %5 {offsets = [0, 0], sizes = [1, 256], strides = [1, 1]} : vector<8x256xf32> to vector<1x256xf32>
    %7 = vector.extract_strided_slice %5 {offsets = [1, 0], sizes = [1, 256], strides = [1, 1]} : vector<8x256xf32> to vector<1x256xf32>
    %8 = vector.extract_strided_slice %5 {offsets = [2, 0], sizes = [1, 256], strides = [1, 1]} : vector<8x256xf32> to vector<1x256xf32>
    %9 = arith.minimumf %6, %7 : vector<1x256xf32>
    %10 = arith.maximumf %6, %7 : vector<1x256xf32>
    %11 = arith.maximumf %10, %8 : vector<1x256xf32>
    %12 = arith.minimumf %10, %8 : vector<1x256xf32>
    %13 = arith.minimumf %9, %12 : vector<1x256xf32>
    %14 = arith.maximumf %9, %12 : vector<1x256xf32>
    %15 = vector.extract_strided_slice %5 {offsets = [3, 0], sizes = [1, 256], strides = [1, 1]} : vector<8x256xf32> to vector<1x256xf32>
    %16 = arith.minimumf %13, %15 : vector<1x256xf32>
    %17 = arith.maximumf %13, %15 : vector<1x256xf32>
    %18 = arith.minimumf %14, %17 : vector<1x256xf32>
    %19 = arith.maximumf %14, %17 : vector<1x256xf32>
    %20 = arith.minimumf %11, %19 : vector<1x256xf32>
    %21 = vector.extract_strided_slice %5 {offsets = [4, 0], sizes = [1, 256], strides = [1, 1]} : vector<8x256xf32> to vector<1x256xf32>
    %22 = arith.minimumf %16, %21 : vector<1x256xf32>
    %23 = arith.maximumf %16, %21 : vector<1x256xf32>
    %24 = arith.minimumf %18, %23 : vector<1x256xf32>
    %25 = arith.maximumf %18, %23 : vector<1x256xf32>
    %26 = arith.minimumf %20, %25 : vector<1x256xf32>
    %27 = vector.extract_strided_slice %5 {offsets = [5, 0], sizes = [1, 256], strides = [1, 1]} : vector<8x256xf32> to vector<1x256xf32>
    %28 = arith.minimumf %22, %27 : vector<1x256xf32>
    %29 = arith.maximumf %22, %27 : vector<1x256xf32>
    %30 = arith.minimumf %24, %29 : vector<1x256xf32>
    %31 = arith.maximumf %24, %29 : vector<1x256xf32>
    %32 = arith.minimumf %26, %31 : vector<1x256xf32>
    %33 = vector.extract_strided_slice %5 {offsets = [6, 0], sizes = [1, 256], strides = [1, 1]} : vector<8x256xf32> to vector<1x256xf32>
    %34 = arith.minimumf %28, %33 : vector<1x256xf32>
    %35 = arith.maximumf %28, %33 : vector<1x256xf32>
    %36 = arith.minimumf %30, %35 : vector<1x256xf32>
    %37 = arith.maximumf %30, %35 : vector<1x256xf32>
    %38 = arith.minimumf %32, %37 : vector<1x256xf32>
    %39 = vector.extract_strided_slice %5 {offsets = [7, 0], sizes = [1, 256], strides = [1, 1]} : vector<8x256xf32> to vector<1x256xf32>
    %40 = arith.minimumf %34, %39 : vector<1x256xf32>
    %41 = arith.maximumf %34, %39 : vector<1x256xf32>
    %42 = arith.minimumf %36, %41 : vector<1x256xf32>
    %43 = arith.maximumf %36, %41 : vector<1x256xf32>
    %44 = arith.minimumf %38, %43 : vector<1x256xf32>
    %cst_4 = arith.constant 0.000000e+00 : f32
    %45 = vector.broadcast %cst_4 : f32 to vector<1x256xf32>
    %46 = arith.maximumf %40, %45 : vector<1x256xf32>
    %47 = math.sqrt %46 : vector<1x256xf32>
    %cst_5 = arith.constant 0.000000e+00 : f32
    %48 = vector.broadcast %cst_5 : f32 to vector<1x256xf32>
    %49 = arith.maximumf %42, %48 : vector<1x256xf32>
    %50 = math.sqrt %49 : vector<1x256xf32>
    %cst_6 = arith.constant 0.000000e+00 : f32
    %51 = vector.broadcast %cst_6 : f32 to vector<1x256xf32>
    %52 = arith.maximumf %44, %51 : vector<1x256xf32>
    %53 = math.sqrt %52 : vector<1x256xf32>
    %54 = arith.subf %47, %50 : vector<1x256xf32>
    %55 = math.exp %54 : vector<1x256xf32>
    %cst_7 = arith.constant 1.000000e+00 : f32
    %56 = vector.broadcast %cst_7 : f32 to vector<1x256xf32>
    %57 = arith.addf %56, %55 : vector<1x256xf32>
    %58 = arith.subf %47, %53 : vector<1x256xf32>
    %59 = math.exp %58 : vector<1x256xf32>
    %60 = arith.addf %57, %59 : vector<1x256xf32>
    %61 = arith.divf %47, %60 : vector<1x256xf32>
    %c0_8 = arith.constant 0 : index
    %c0_9 = arith.constant 0 : index
    %62 = vector.load %arg3[%c0_8, %c0_9] : memref<1x256xf32, #tpu.memory_space<vmem>>, vector<1x256xf32>
    tpu.vector_store %arg3[%c0_8, %c0_9], %61 {strides = array<i32>} : memref<1x256xf32, #tpu.memory_space<vmem>>, vector<1x256xf32>,
    return
  }
  func.func @transform_0(%arg0: i32) -> (i32, i32) {
    %c0_i32 = arith.constant 0 : i32
    %c0_i32_0 = arith.constant 0 : i32
    %c0_i32_1 = arith.constant 0 : i32
    return %c0_i32, %c0_i32_0 : i32, i32
  }
  func.func @transform_1(%arg0: i32) -> (i32, i32) {
    %c0_i32 = arith.constant 0 : i32
    %c0_i32_0 = arith.constant 0 : i32
    return %c0_i32, %arg0 : i32, i32
  }
  func.func @transform_2(%arg0: i32) -> (i32, i32) {
    %c0_i32 = arith.constant 0 : i32
    %c0_i32_0 = arith.constant 0 : i32
    return %c0_i32, %arg0 : i32, i32
  }
}

</mosaic_0001>

<bundles_post_ra>
// kernel: tpu_custom_call.1
= control target key start
LH: loop header
LB: loop body
LE: loop exit
PB: predicated region body
PF: predicated region fallthrough
CT: control target
= control target key end

     0   :  { %7 = vsyncpa [#allocation3], 0  ;;  %s1064_s0 = inlined_call_operand.hbm [shape: f32[8,65], index: 0, kind: input, shape index: {}]   ;;  %s1065_s1 = inlined_call_operand.hbm [shape: f32[32,512], index: 1, kind: input, shape index: {}]   ;;  %s1066_s2 = inlined_call_operand.hbm [shape: f32[1,512], index: 2, kind: output, shape index: {}]  }
   0x1   :  { %8 = vsyncpa [#allocation6], 0 }
   0x2   :  { %10 = vsyncpa [#allocation6 + $0x1], 0 }
   0x3   :  { %11 = vsyncpa [#allocation4], 0 }
   0x4   :  { %13 = vsyncpa [#allocation4 + $0x1], 0  ;;  %s827_s9 = smov 0   ;;  %s829_s10 = smov 0  }
   0x5   :  { %s831_s11 = smov 0   ;;  %s833_s12 = smov 0  }
   0x6 LB: > { %s848_s13 = sadd.s32 4294967295, %s805_s12   ;;  %s570_s14 = sadd.s32 4294967294, %s805_s12   ;;  %s805_s12 = sphi %s833_s12, %s1077_s12   ;;  %s801_s11 = sphi %s831_s11, %s1076_s11   ;;  %s797_s10 = sphi %s829_s10, %s1075_s10   ;;  %s793_s9 = sphi %s827_s9, %s1074_s9  }
   0x7   : > { %s852_s15 = sadd.s32 1, %s805_s12   ;;  %s47_s16 = sadd.s32 1, %s801_s11 }
   0x8   : > { %s44_s17 = ssub.s32 %s805_s12, %s852_s15  ;;  %p54_p0 = scmp.ne.s32.totalorder %s801_s11, %s797_s10 }
   0x9   : > { %p45_p1 = scmp.eq.s32.totalorder %s44_s17, 0  ;;  %p55_p2 = scmp.eq.s32.totalorder %s805_s12, 0 }
   0xa   : > { %p60_p3 = scmp.ne.s32.totalorder %s797_s10, %s793_s9  ;;  %p61_p4 = scmp.eq.s32.totalorder %s848_s13, 0 }
   0xb   : > { %s864_s18 = scalar_select %p45_p1, %s801_s11, %s47_s16  }
   0xc   : > { %p866_p5 = por %p55_p2, %p54_p0  ;;  %p872_p6 = por %p61_p4, %p60_p3 }
   0xd   : > { %p84_p7 = scmp.eq.s32.totalorder %s848_s13, 1  ;;  %p90_p8 = scmp.eq.s32.totalorder %s570_s14, 1 }
   0xe   : > { %p571_p9 = scmp.ge.s32.totalorder %s805_s12, 1  ;;  %p97_p10 = scmp.lt.s32.totalorder %s805_s12, 3 }
   0xf   : > { %p879_p11 = por %p84_p7, %p54_p0  ;;  %p883_p12 = por %p90_p8, %p60_p3 }
  0x10   : > { %p887_p13 = pnand %p571_p9, %p97_p10  ;;  %s109_s26 = sshll.u32 %s1064_s0, 4  ;;  %s110_s26 = int_to_ptr.hbm [resolvable:$true] %s109_s26 }
  0x11   : > { %s807_s27 = smov [#allocation2]   ;;  %p611_p3 = scmp.lt.s32.totalorder %s805_s12, 2 }
  0x12   : > { %p598_p1 = pneg %p887_p13  ;;  %s111_s28 = sshll.u32 %s807_s27, 4  ;;  %s112_s28 = int_to_ptr.vmem [resolvable:$true] %s111_s28 }
  0x13   : > { %s122_s29 = sand.u32 1, %s801_s11   ;;  %p903_p7 = pnand %p611_p3, %p866_p5 }
  0x14   : > { %p599_p2 = pnand %p598_p1, %p61_p4  ;;  %s574_s3 = sshll.u32 %s122_s29, 6 }
  0x15   : > { %s589_s4 = sshll.u32 %s805_s12, 4  ;;  %s126_s14 = scalar_lea.vmem [#allocation5], %s574_s3 }
  0x16   : > { %601 = dma.hbm_to_vmem [thread:$0]  (!%p599_p2), %s110_s26, 128, %s112_s28, [#allocation3]  }
  0x17   : > { %s131_s7 = scalar_lea.hbm %s1065_s1, %s589_s4  ;;  %s134_s16 = sshll.u32 %s126_s14, 4  ;;  %s135_s16 = int_to_ptr.vmem [resolvable:$true] %s134_s16 }
  0x18   : > { %s132_s8 = sshll.u32 %s131_s7, 4  ;;  %s123_s17 = scalar_lea.sflag [#allocation6], %s122_s29  ;;  %s133_s8 = int_to_ptr.hbm [resolvable:$true] %s132_s8 }
  0x19   : > { %s705_s24 = sshra.s32 %s133_s8, 4  ;;  %p709_p8 = pneg %p903_p7  ;;  %s706_s24 = int_to_ptr.hbm [resolvable:$true] %s705_s24 }
  0x1a   : > { %s707_s19 = scalar_lea.hbm %s706_s24, 64  ;;  %s712_s27 = scalar_lea.hbm %s1065_s1, 128 }
  0x1b   : > { %p708_p5 = scmp.ne.s32.totalorder %s706_s24, %s707_s19  ;;  %p713_p1 = scmp.lt.s32.totalorder %s706_s24, %s1065_s1 }
  0x1c   : > { %p714_p2 = scmp.lt.s32.totalorder %s712_s27, %s707_s19 }
  0x1d   : > { %p710_p9 = pnand %p709_p8, %p708_p5 }
  0x1e   : > { %p715_p3 = por %p714_p2, %p713_p1 }
  0x1f   : > { %p711_p10 = pneg %p710_p9 }
  0x21   : > { %p716_p0 = pnand %p715_p3, %p711_p10 }
  0x23   : > { %719 = shalt.err (!%p716_p0)
}
  0x24   : > { %s808_s29 = smov 512   ;;  %s809_s3 = smov 256  }
  0x25   : > { %s810_s5 = smov 16   ;;  %146 = sbr.rel (%p887_p13) target bundleno = 278 (0x116), region = 28 }
  0x26   : > { %605 = dma.hbm_to_vmem [thread:$0]  (!%p903_p7), %s133_s8, 1024, %s135_s16, %s123_s17, %s808_s29, %s809_s3, %s810_s5  }
  0x2a   : > { %780 = dma.done.wait (%p61_p4), [#allocation3], 128  }
  0x2b   : > { %782 = vsyncadd (%p61_p4), [#allocation3], 4294967168  ;;  %s928_s6 = sand.u32 1, %s797_s10  }
  0x2c   : > { %s579_s7 = sshll.u32 %s928_s6, 6  ;;  %s154_s14 = scalar_lea.sflag [#allocation6], %s928_s6 }
  0x2d   : > { %s157_s24 = scalar_lea.vmem [#allocation5], %s579_s7 }
  0x2e   : > { %784 = dma.done.wait (%p872_p6), %s154_s14, 1024  }
  0x2f   : > { %786 = vsyncadd (%p872_p6), %s154_s14, 4294966272  ;;  %vm202_vm0 = vcmask 1040384   ;;  %v811_v0 = vmov 1.0   ;;  %v188_v1 = vld [vmem:[%s157_s24 + $0x30] sm:$0xff]  ;;  %v189_v2 = vld [vmem:[%s157_s24 + $0x38] sm:$0xff]  ;;  %vm198_vm1 = vcmask 531456  }
  0x30   : > { %581 = vmatpush.msk.msra.mxu0 %vm202_vm0, %v811_v0  ;;  %583 = vmatpush.msk.msra.mxu1 %vm202_vm0, %v811_v0  ;;  %v186_v3 = vld [vmem:[%s157_s24 + $0x20] sm:$0xff]  ;;  %v196_v4 = vmul.f32 %v188_v1, %v188_v1  ;;  %v197_v5 = vmul.f32 %v189_v2, %v189_v2  ;;  %v187_v7 = vld [vmem:[%s157_s24 + $0x28] sm:$0xff]  ;;  %v184_v8 = vld [vmem:[%s157_s24 + $0x10] sm:$0xff]  ;;  %s580_s20 = sshll.u32 %s928_s6, 1  ;;  %s586_s23 = sshll.u32 %s848_s13, 1 }
  0x31   : > { %v194_v6 = vmul.f32 %v186_v3, %v186_v3  ;;  %v185_v9 = vld [vmem:[%s157_s24 + $0x18] sm:$0xff]  ;;  %v195_v10 = vmul.f32 %v187_v7, %v187_v7  ;;  %v182_v11 = vld [vmem:[%s157_s24] sm:$0xff]  ;;  %v183_v12 = vld [vmem:[%s157_s24 + $0x8] sm:$0xff]  ;;  %v192_v13 = vmul.f32 %v184_v8, %v184_v8  ;;  %s483_s16 = scalar_lea.hbm %s1066_s2, %s586_s23  ;;  %s178_s13 = scalar_lea.vmem [#allocation7], %s580_s20 }
  0x32   : > { %214 = vmatpush.msra.mxu0 %v196_v4  ;;  %234 = vmatpush.msra.mxu1 %v197_v5  ;;  %v193_v14 = vmul.f32 %v185_v9, %v185_v9  ;;  %v190_v15 = vmul.f32 %v182_v11, %v182_v11  ;;  %v191_v16 = vmul.f32 %v183_v12, %v183_v12  ;;  %v181_v17 = vld [vmem:[#allocation2] sm:$0xff]  ;;  %s485_s17 = sshll.u32 %s178_s13, 4  ;;  %s487_s19 = sshll.u32 %s483_s16, 4  ;;  %s486_s17 = int_to_ptr.vmem [resolvable:$true] %s485_s17  ;;  %s488_s19 = int_to_ptr.hbm [resolvable:$true] %s487_s19 }
  0x33   : > { %s473_s25 = scalar_lea.sflag [#allocation4], %s928_s6  ;;  %s749_s26 = sshra.s32 %s488_s19, 4  ;;  %s750_s26 = int_to_ptr.hbm [resolvable:$true] %s749_s26 }
  0x34   : > { %215 = vmatpush.msra.mxu0 %v194_v6  ;;  %235 = vmatpush.msra.mxu1 %v195_v10  ;;  %s751_s27 = scalar_lea.hbm %s750_s26, 2  ;;  %s755_s29 = scalar_lea.hbm %s1066_s2, 4 }
  0x35   : > { %p752_p4 = scmp.ne.s32.totalorder %s750_s26, %s751_s27  ;;  %p756_p0 = scmp.lt.s32.totalorder %s750_s26, %s1066_s2 }
  0x36   : > { %216 = vmatpush.msra.mxu0 %v192_v13  ;;  %236 = vmatpush.msra.mxu1 %v193_v14  ;;  %p757_p7 = scmp.lt.s32.totalorder %s755_s29, %s751_s27 }
  0x37   : > { %p753_p6 = pnand %p752_p4, %p879_p11 }
  0x38   : > { %217 = vmatpush.msra.mxu0 %v190_v15  ;;  %237 = vmatpush.msra.mxu1 %v191_v16  ;;  %p758_p5 = por %p757_p7, %p756_p0 }
  0x39   : > { %p754_p13 = pneg %p753_p6 }
  0x3a   : > { %218 = vmatpush.msra.mxu0 %v188_v1  ;;  %238 = vmatpush.msra.mxu1 %v189_v2 }
  0x3b   : > { %p759_p8 = pnand %p758_p5, %p754_p13 }
  0x3c   : > { %219 = vmatpush.msra.mxu0 %v186_v3  ;;  %239 = vmatpush.msra.mxu1 %v187_v7 }
  0x3e   : > { %220 = vmatpush.msra.mxu0 %v184_v8  ;;  %240 = vmatpush.msra.mxu1 %v185_v9 }
  0x40   : > { %221 = vmatpush.msra.mxu0 %v182_v11  ;;  %241 = vmatpush.msra.mxu1 %v183_v12 }
  0x41   : > { %582 = vmatmul.msk.f32.vlgmr.msra.gmra.mxu0 %vm198_vm1, %v181_v17  ;;  %584 = vmatmul.msk.f32.vlgmr.msra.gmra.mxu1 %vm198_vm1, %v181_v17 }
  0xbe   : > { %v223_v18 = vpop.f32.mrf.mxu0  ;;  %v938_v19 = vpop.f32.mrf.mxu1 }
  0xbf   : > { %v248_v20 = vrot.slane %v223_v18, 1  ;;  %v256_v21 = vrot.slane %v223_v18, 2  ;;  %v249_v22 = vrot.slane %v938_v19, 1  ;;  %v257_v25 = vrot.slane %v938_v19, 2 }
  0xc0   : > { %v268_v28 = vrot.slane %v223_v18, 3  ;;  %v282_v29 = vrot.slane %v223_v18, 4  ;;  %v296_v30 = vrot.slane %v223_v18, 5  ;;  %v310_v31 = vrot.slane %v223_v18, 6 }
  0xc1   : > { %v254_v23 = vmax.f32 %v223_v18, %v248_v20  ;;  %v255_v24 = vmax.f32 %v938_v19, %v249_v22  ;;  %v252_v26 = vmin.f32 %v223_v18, %v248_v20  ;;  %v253_v32 = vmin.f32 %v938_v19, %v249_v22 }
  0xc2   : > { %v324_v35 = vrot.slane %v223_v18, 7  ;;  %v269_v36 = vrot.slane %v938_v19, 3  ;;  %v283_v37 = vrot.slane %v938_v19, 4  ;;  %v297_v40 = vrot.slane %v938_v19, 5 }
  0xc3   : > { %v262_v27 = vmin.f32 %v254_v23, %v256_v21  ;;  %v263_v33 = vmin.f32 %v255_v24, %v257_v25  ;;  %v260_v38 = vmax.f32 %v254_v23, %v256_v21  ;;  %v311_v41 = vrot.slane %v938_v19, 6 }
  0xc4   : > { %v325_v45 = vrot.slane %v938_v19, 7  ;;  %v261_v46 = vmax.f32 %v255_v24, %v257_v25 }
  0xc5   : > { %v264_v34 = vmin.f32 %v252_v26, %v262_v27  ;;  %v265_v39 = vmin.f32 %v253_v32, %v263_v33  ;;  %v266_v42 = vmax.f32 %v252_v26, %v262_v27  ;;  %v267_v47 = vmax.f32 %v253_v32, %v263_v33 }
  0xc7   : > { %v272_v43 = vmin.f32 %v264_v34, %v268_v28  ;;  %v274_v44 = vmax.f32 %v264_v34, %v268_v28  ;;  %v273_v48 = vmin.f32 %v265_v39, %v269_v36  ;;  %v275_v49 = vmax.f32 %v265_v39, %v269_v36 }
  0xc9   : > { %v276_v50 = vmin.f32 %v266_v42, %v274_v44  ;;  %v278_v51 = vmax.f32 %v266_v42, %v274_v44  ;;  %v286_v52 = vmin.f32 %v272_v43, %v282_v29  ;;  %v288_v53 = vmax.f32 %v272_v43, %v282_v29 }
  0xca   : > { %v277_v54 = vmin.f32 %v267_v47, %v275_v49  ;;  %v279_v55 = vmax.f32 %v267_v47, %v275_v49  ;;  %v287_v56 = vmin.f32 %v273_v48, %v283_v37  ;;  %v289_v57 = vmax.f32 %v273_v48, %v283_v37 }
  0xcb   : > { %v280_v58 = vmin.f32 %v260_v38, %v278_v51  ;;  %v290_v59 = vmin.f32 %v276_v50, %v288_v53  ;;  %v292_v60 = vmax.f32 %v276_v50, %v288_v53  ;;  %v300_v61 = vmin.f32 %v286_v52, %v296_v30 }
  0xcc   : > { %v302_v62 = vmax.f32 %v286_v52, %v296_v30  ;;  %v281_v63 = vmin.f32 %v261_v46, %v279_v55  ;;  %v291_v0 = vmin.f32 %v277_v54, %v289_v57  ;;  %v293_v1 = vmax.f32 %v277_v54, %v289_v57 }
  0xcd   : > { %v294_v2 = vmin.f32 %v280_v58, %v292_v60  ;;  %v314_v3 = vmin.f32 %v300_v61, %v310_v31  ;;  %v316_v4 = vmax.f32 %v300_v61, %v310_v31  ;;  %v301_v5 = vmin.f32 %v287_v56, %v297_v40 }
  0xce   : > { %v304_v6 = vmin.f32 %v290_v59, %v302_v62  ;;  %v306_v7 = vmax.f32 %v290_v59, %v302_v62  ;;  %v295_v8 = vmin.f32 %v281_v63, %v293_v1  ;;  %v303_v9 = vmax.f32 %v287_v56, %v297_v40 }
  0xcf   : > { %v328_v10 = vmin.f32 %v314_v3, %v324_v35  ;;  %v330_v11 = vmax.f32 %v314_v3, %v324_v35  ;;  %v315_v12 = vmin.f32 %v301_v5, %v311_v41  ;;  %v317_v13 = vmax.f32 %v301_v5, %v311_v41 }
  0xd0   : > { %v308_v14 = vmin.f32 %v294_v2, %v306_v7  ;;  %v318_v15 = vmin.f32 %v304_v6, %v316_v4  ;;  %v320_v16 = vmax.f32 %v304_v6, %v316_v4  ;;  %v305_v17 = vmin.f32 %v291_v0, %v303_v9 }
  0xd1   : > { %v949_v18 = vmax.f32 %v328_v10, 0.0  ;;  %v307_v19 = vmax.f32 %v291_v0, %v303_v9  ;;  %v329_v20 = vmin.f32 %v315_v12, %v325_v45  ;;  %v331_v21 = vmax.f32 %v315_v12, %v325_v45 }
  0xd2   : > { %v322_v22 = vmin.f32 %v308_v14, %v320_v16  ;;  %v332_v23 = vmin.f32 %v318_v15, %v330_v11  ;;  %v334_v24 = vmax.f32 %v318_v15, %v330_v11  ;;  %v319_v25 = vmin.f32 %v305_v17, %v317_v13 }
  0xd3   : > { %v309_v26 = vmin.f32 %v295_v8, %v307_v19  ;;  %v321_v27 = vmax.f32 %v305_v17, %v317_v13  ;;  %v951_v28 = vmax.f32 %v329_v20, 0.0  ;;  %651 = vrsqrt.f32 %v949_v18 }
  0xd4   : > { %v336_v29 = vmin.f32 %v322_v22, %v334_v24  ;;  %v954_v30 = vmax.f32 %v332_v23, 0.0  ;;  %v333_v31 = vmin.f32 %v319_v25, %v331_v21  ;;  %v335_v32 = vmax.f32 %v319_v25, %v331_v21 }
  0xd5   : > { %v323_v33 = vmin.f32 %v309_v26, %v321_v27  ;;  %653 = vrsqrt.f32 %v951_v28  ;;  %vm347_vm2 = vcmp.eq.f32.partialorder %v949_v18, inf  ;;  %v350_v53 = vand.u32 2147483648, %v949_v18 }
  0xd6   : > { %v956_v34 = vmax.f32 %v336_v29, 0.0  ;;  %v958_v35 = vmax.f32 %v333_v31, 0.0  ;;  %655 = vrsqrt.f32 %v954_v30  ;;  %vm349_vm3 = vcmp.eq.f32.partialorder %v949_v18, 0.0 }
  0xd7   : > { %v337_v36 = vmin.f32 %v323_v33, %v335_v32  ;;  %vm359_vm4 = vcmp.eq.f32.partialorder %v951_v28, inf  ;;  %vm361_vm5 = vcmp.eq.f32.partialorder %v951_v28, 0.0  ;;  %v362_v61 = vand.u32 2147483648, %v951_v28 }
  0xd8   : > { %657 = vrsqrt.f32 %v958_v35  ;;  %vm373_vm6 = vcmp.eq.f32.partialorder %v954_v30, inf  ;;  %vm375_vm7 = vcmp.eq.f32.partialorder %v954_v30, 0.0  ;;  %v376_v7 = vand.u32 2147483648, %v954_v30 }
  0xd9   : > { %v652_v37 = vpop.eup %651  ;;  %v963_v38 = vmax.f32 %v337_v36, 0.0  ;;  %659 = vrsqrt.f32 %v956_v34  ;;  %vm385_vm8 = vcmp.eq.f32.partialorder %v958_v35, inf  ;;  %vm387_vm9 = vcmp.eq.f32.partialorder %v958_v35, 0.0 }
  0xda   : > { %v341_v39 = vmul.f32 %v652_v37, %v949_v18  ;;  %v388_v14 = vand.u32 2147483648, %v958_v35  ;;  %vm399_vm10 = vcmp.eq.f32.partialorder %v956_v34, inf  ;;  %vm401_vm11 = vcmp.eq.f32.partialorder %v956_v34, 0.0 }
  0xdb   : > { %661 = vrsqrt.f32 %v963_v38  ;;  %v654_v40 = vpop.eup %653  ;;  %v402_v21 = vand.u32 2147483648, %v956_v34  ;;  %vm411_vm12 = vcmp.eq.f32.partialorder %v963_v38, inf  ;;  %v414_v32 = vand.u32 2147483648, %v963_v38 }
  0xdc   : > { %v342_v41 = vmul.f32 %v652_v37, %v341_v39  ;;  %v656_v42 = vpop.eup %655  ;;  %v353_v43 = vmul.f32 %v654_v40, %v951_v28  ;;  %vm413_vm13 = vcmp.eq.f32.partialorder %v963_v38, 0.0 }
  0xdd   : > { %v367_v46 = vmul.f32 %v656_v42, %v954_v30 }
  0xde   : > { %v658_v44 = vpop.eup %657  ;;  %v343_v45 = vmul.f32 0.5, %v342_v41  ;;  %v354_v47 = vmul.f32 %v654_v40, %v353_v43 }
  0xdf   : > { %v379_v48 = vmul.f32 %v658_v44, %v958_v35  ;;  %v660_v49 = vpop.eup %659  ;;  %v368_v51 = vmul.f32 %v656_v42, %v367_v46 }
  0xe0   : > { %v344_v50 = vsub.f32 1.5, %v343_v45  ;;  %v355_v54 = vmul.f32 0.5, %v354_v47  ;;  %v393_v56 = vmul.f32 %v660_v49, %v956_v34 }
  0xe1   : > { %v662_v52 = vpop.eup %661  ;;  %v380_v55 = vmul.f32 %v658_v44, %v379_v48  ;;  %v369_v58 = vmul.f32 0.5, %v368_v51 }
  0xe2   : > { %v345_v57 = vmul.f32 %v652_v37, %v344_v50  ;;  %v405_v59 = vmul.f32 %v662_v52, %v963_v38  ;;  %v356_v60 = vsub.f32 1.5, %v355_v54  ;;  %v394_v63 = vmul.f32 %v660_v49, %v393_v56 }
  0xe3   : > { %v381_v62 = vmul.f32 0.5, %v380_v55  ;;  %v370_v1 = vsub.f32 1.5, %v369_v58 }
  0xe4   : > { %v346_v0 = vmul.f32 %v345_v57, %v949_v18  ;;  %v406_v2 = vmul.f32 %v662_v52, %v405_v59  ;;  %v357_v3 = vmul.f32 %v654_v40, %v356_v60  ;;  %v395_v5 = vmul.f32 0.5, %v394_v63 }
  0xe5   : > { %v382_v4 = vsub.f32 1.5, %v381_v62  ;;  %v371_v6 = vmul.f32 %v656_v42, %v370_v1 }
  0xe6   : > { %v407_v8 = vmul.f32 0.5, %v406_v2  ;;  %v358_v9 = vmul.f32 %v357_v3, %v951_v28  ;;  %v396_v11 = vsub.f32 1.5, %v395_v5  ;;  %v348_v12 = vsel %vm347_vm2, %v949_v18, %v346_v0 }
  0xe7   : > { %v383_v10 = vmul.f32 %v658_v44, %v382_v4  ;;  %v372_v13 = vmul.f32 %v371_v6, %v954_v30  ;;  %v1003_v23 = vsel %vm349_vm3, %v350_v53, %v348_v12  ;;  %v467_v4 = vlaneseq }
  0xe8   : > { %v408_v15 = vsub.f32 1.5, %v407_v8  ;;  %v360_v16 = vsel %vm359_vm4, %v951_v28, %v358_v9  ;;  %v397_v19 = vmul.f32 %v660_v49, %v396_v11 }
  0xe9   : > { %v384_v17 = vmul.f32 %v383_v10, %v958_v35  ;;  %v374_v20 = vsel %vm373_vm6, %v954_v30, %v372_v13  ;;  %v1013_v27 = vsel %vm361_vm5, %v362_v61, %v360_v16 }
  0xea   : > { %v409_v22 = vmul.f32 %v662_v52, %v408_v15  ;;  %v377_v24 = vsel %vm375_vm7, %v376_v7, %v374_v20  ;;  %v398_v26 = vmul.f32 %v397_v19, %v956_v34  ;;  %vm469_vm7 = vcmp.lt.s32.totalorder %v467_v4, 256 }
  0xeb   : > { %v386_v25 = vsel %vm385_vm8, %v958_v35, %v384_v17  ;;  %v416_v31 = vsub.f32 %v1003_v23, %v377_v24 }
  0xec   : > { %v389_v29 = vsel %vm387_vm9, %v388_v14, %v386_v25  ;;  %v410_v18 = vmul.f32 %v409_v22, %v963_v38  ;;  %v400_v30 = vsel %vm399_vm10, %v956_v34, %v398_v26 }
  0xed   : > { %v417_v33 = vsub.f32 %v1013_v27, %v389_v29  ;;  %v403_v36 = vsel %vm401_vm11, %v402_v21, %v400_v30  ;;  %v418_v37 = vmul.f32 1.442695, %v416_v31 }
  0xee   : > { %v412_v28 = vsel %vm411_vm12, %v963_v38, %v410_v18  ;;  %v424_v40 = vsub.f32 %v1003_v23, %v403_v36 }
  0xef   : > { %v415_v35 = vsel %vm413_vm13, %v414_v32, %v412_v28  ;;  %v420_v39 = vmul.f32 1.442695, %v417_v33  ;;  %663 = vpow2.f32 %v418_v37 }
  0xf0   : > { %v425_v41 = vsub.f32 %v1013_v27, %v415_v35  ;;  %v426_v34 = vmul.f32 1.442695, %v424_v40 }
  0xf1   : > { %665 = vpow2.f32 %v420_v39 }
  0xf2   : > { %v428_v42 = vmul.f32 1.442695, %v425_v41  ;;  %667 = vpow2.f32 %v426_v34 }
  0xf4   : > { %669 = vpow2.f32 %v428_v42 }
  0xf5   : > { %v664_v43 = vpop.eup %663 }
  0xf6   : > { %v422_v45 = vadd.f32 1.0, %v664_v43 }
  0xf7   : > { %v666_v44 = vpop.eup %665 }
  0xf8   : > { %v423_v46 = vadd.f32 1.0, %v666_v44  ;;  %v668_v47 = vpop.eup %667 }
  0xf9   : > { %v430_v48 = vadd.f32 %v668_v47, %v422_v45 }
  0xfa   : > { %v670_v38 = vpop.eup %669 }
  0xfb   : > { %v431_v49 = vadd.f32 %v670_v38, %v423_v46  ;;  %671 = vrcp.f32 %v430_v48  ;;  %v443_v57 = vand.u32 2147483648, %v430_v48  ;;  %v441_v59 = vand.u32 2147483647, %v430_v48 }
  0xfc   : > { %vm437_vm1 = vweird.f32 %v430_v48 }
  0xfd   : > { %673 = vrcp.f32 %v431_v49  ;;  %v458_v58 = vand.u32 2147483648, %v431_v49  ;;  %v456_v61 = vand.u32 2147483647, %v431_v49  ;;  %vm452_vm3 = vweird.f32 %v431_v49 }
  0xfe   : > { %v444_v1 = vor.u32 1.1754944e-38, %v443_v57  ;;  %vm442_vm5 = vcmp.eq.f32.partialorder %v441_v59, 8.507059e+37 }
  0xff   : > { %v459_v2 = vor.u32 1.1754944e-38, %v458_v58  ;;  %vm457_vm6 = vcmp.eq.f32.partialorder %v456_v61, 8.507059e+37 }
 0x101   : > { %v672_v50 = vpop.eup %671 }
 0x102   : > { %v433_v52 = vmul.f32 %v672_v50, %v430_v48  ;;  %vm438_vm14 = vweird.f32 %v672_v50 }
 0x103   : > { %v674_v51 = vpop.eup %673  ;;  %vm439_vm2 = vmor %vm437_vm1, %vm438_vm14 }
 0x104   : > { %v448_v53 = vmul.f32 %v674_v51, %v431_v49  ;;  %v434_v54 = vsub.f32 1.0, %v433_v52  ;;  %vm453_vm15 = vweird.f32 %v674_v51 }
 0x105   : > { %vm454_vm4 = vmor %vm452_vm3, %vm453_vm15 }
 0x106   : > { %v449_v55 = vsub.f32 1.0, %v448_v53  ;;  %v435_v56 = vmul.f32 %v672_v50, %v434_v54 }
 0x108   : > { %v450_v60 = vmul.f32 %v674_v51, %v449_v55  ;;  %v436_v62 = vadd.f32 %v672_v50, %v435_v56 }
 0x10a   : > { %v451_v63 = vadd.f32 %v674_v51, %v450_v60  ;;  %v440_v0 = vsel %vm439_vm2, %v672_v50, %v436_v62 }
 0x10b   : > { %v445_v5 = vsel %vm442_vm5, %v444_v1, %v440_v0 }
 0x10c   : > { %v455_v3 = vsel %vm454_vm4, %v674_v51, %v451_v63  ;;  %v446_v8 = vmul.f32 %v445_v5, %v1003_v23 }
 0x10d   : > { %v460_v6 = vsel %vm457_vm6, %v459_v2, %v455_v3 }
 0x10e   : > { %v461_v7 = vmul.f32 %v460_v6, %v1013_v27 }
 0x110   : > { %v464_v9 = vrot.slane %v461_v7, 7 }
 0x112   : > { %v465_v10 = vsel %vm202_vm0, %v446_v8, %v464_v9 }
 0x113   : > { %471 = vst.msk [vmem:[%s178_s13] sm:$0x3] %vm469_vm7, %v465_v10 }
 0x114   : > { %762 = shalt.err (!%p759_p8)
}
 0x115   : > { %596 = dma.vmem_to_hbm [thread:$0]  (%p879_p11), %s486_s17, 32, %s488_s19, %s473_s25  }
 0x116 PF: > { %s499_s6 = sand.u32 1, %s793_s9   ;;  %p1073_p9 = scmp.ge.s32.totalorder %s805_s12, 2 }
 0x117   : > { %s500_s7 = scalar_lea.sflag [#allocation4], %s499_s6 }
 0x118   : > { %p607_p10 = pnand %p1073_p9, %p883_p12 }
 0x11a   : > { %p608_p1 = pneg %p607_p10 }
 0x11c   : > { %788 = dma.done.wait (%p608_p1), %s500_s7, 32  }
 0x11d   : > { %790 = vsyncadd (%p608_p1), %s500_s7, 4294967264  ;;  %p16_p2 = scmp.ge.s32.totalorder %s852_s15, 4   ;;  %s1074_s9 = smov %s797_s10 }
 0x11e   : > { %s1075_s10 = smov %s801_s11  ;;  %s1076_s11 = smov %s864_s18 }
 0x11f   : > { %s1077_s12 = smov %s852_s15  ;;  %18 = sbr.rel (!%p16_p2) target bundleno = 6 (0x6), region = 78 }
 0x124   :  { %506 = vsyncpa [#allocation3], 1 }
 0x125   :  { %508 = vsyncpa [#allocation3 + $0x1], 1 }
 0x126   :  { %509 = vsyncpa [#allocation6], 1 }
 0x127   :  { %511 = vsyncpa [#allocation6 + $0x1], 1 }
 0x128   :  { %512 = vsyncpa [#allocation4], 1 }
 0x129   :  { %514 = vsyncpa [#allocation4 + $0x1], 1 }

</bundles_post_ra>
